<compile_context>
chip_gen: v7x
topology: tpu7x:2x2x1
jax: 0.10.0
libtpu: 0.0.40
codegen_flags: <defaults>
</compile_context>

<pallas_src>
import functools

import jax
import jax.numpy as jnp
from jax import lax
from jax.experimental import pallas as pl
from jax.experimental.pallas import tpu as pltpu


def _round_up(n, m):
    return (n + m - 1) // m * m


def rnn_kernel(x_ref, p_ref, out_ref, *, seq_len, batch, input_size,
               hidden_size, output_size):
    S, B, I, H, O = seq_len, batch, input_size, hidden_size, output_size

    # Static row offsets inside the packed parameter slab (see pack_params).
    whh_off = 0
    wih_off = H
    bias_off = H + I
    wfc_off = bias_off + 1
    bfc_off = wfc_off + O

    # ---- Input projection, hoisted off the serial chain (VPU, K=I) ----------
    # xw[s, b, :] = x[s, b, :] @ W_ih^T + (b_ih + b_hh), computed as I broadcast
    # FMAs on the VPU rather than an MXU matmul with K=4.
    x = x_ref[...]                                               # (S, B, I)
    xw = jnp.zeros((S, B, H), jnp.float32) + p_ref[bias_off:bias_off + 1, :]
    for j in range(I):
        xw = xw + x[:, :, j:j + 1] * p_ref[wih_off + j:wih_off + j + 1, :]

    w_hh = p_ref[whh_off:whh_off + H, :]                         # (H, H), aligned

    # ---- Fully unrolled tanh recurrence (S static & small) ------------------
    # Each xw[t] sits in its own (8,128)-padded tile, so the per-step slice is
    # tile-aligned and adds no sublane shuffles to the serial dependence chain.
    # TODO(synk): W_hh could be kept staged in the MXU across the 8 steps via
    # pltpu.matmul_push_rhs/matmul_acc_lhs/matmul_pop; kept jnp.dot for
    # portability/robustness across chip generations.
    h = jnp.zeros((B, H), jnp.float32)
    for t in range(S):
        h = jnp.tanh(xw[t] + jnp.dot(h, w_hh, preferred_element_type=jnp.float32))

    # ---- Linear head on the last hidden state --------------------------------
    w_fc = p_ref[wfc_off:wfc_off + O, :]                         # (O, H)
    b_fc = p_ref[bfc_off:bfc_off + 1, 0:O]                       # (1, O)
    if O == 1:
        # VPU multiply + cross-lane reduce; avoids an N=1 MXU fill/drain.
        out = jnp.sum(h * w_fc, axis=-1, keepdims=True) + b_fc
    else:
        out = lax.dot_general(h, w_fc, (((1,), (1,)), ((), ())),
                              preferred_element_type=jnp.float32) + b_fc
    out_ref[...] = out.astype(out_ref.dtype)


def pack_params(w_ih, w_hh, b_ih, b_hh, w_fc, b_fc):
    """One-time packing of every weight/bias into a single (rows, H) f32 slab.

    Row layout (H = hidden, I = input, O = output):
      [0 : H)             W_hh^T          (aligned at a sublane-tile boundary)
      [H : H+I)           W_ih^T
      [H+I]               b_ih + b_hh
      [H+I+1 : H+I+1+O)   W_fc
      [H+I+1+O]           b_fc (in columns 0:O)
    Call once at model-setup time, NOT on the per-inference hot path.
    """
    H, I = w_ih.shape
    O = w_fc.shape[0]
    rows = _round_up(H + I + 1 + O + 1, 8)
    p = jnp.zeros((rows, H), jnp.float32)
    p = p.at[0:H, :].set(jnp.asarray(w_hh, jnp.float32).T)
    p = p.at[H:H + I, :].set(jnp.asarray(w_ih, jnp.float32).T)
    p = p.at[H + I, :].set(jnp.asarray(b_ih, jnp.float32)
                           + jnp.asarray(b_hh, jnp.float32))
    p = p.at[H + I + 1:H + I + 1 + O, :].set(jnp.asarray(w_fc, jnp.float32))
    p = p.at[H + I + 1 + O, 0:O].set(jnp.asarray(b_fc, jnp.float32))
    return p


def price_predictor_rnn(x, packed_params, *, hidden_size, output_size):
    """x: (S, B, I) float32. packed_params: output of pack_params()."""
    S, B, I = x.shape
    kernel = functools.partial(rnn_kernel, seq_len=S, batch=B, input_size=I,
                               hidden_size=hidden_size, output_size=output_size)
    vmem = pl.BlockSpec(memory_space=pltpu.MemorySpace.VMEM)  # whole array in VMEM
    return pl.pallas_call(
        kernel,
        out_shape=jax.ShapeDtypeStruct((B, output_size), jnp.float32),
        in_specs=[vmem, vmem],
        out_specs=vmem,
    )(jnp.asarray(x, jnp.float32), packed_params)


def reference_rnn(x, w_ih, w_hh, b_ih, b_hh, w_fc, b_fc):
    """Pure-JAX reference matching torch nn.RNN(tanh) + Linear."""
    S, B, I = x.shape
    H = w_hh.shape[0]
    h = jnp.zeros((B, H), jnp.float32)
    for t in range(S):
        h = jnp.tanh(x[t] @ w_ih.T + b_ih + h @ w_hh.T + b_hh)
    return h @ w_fc.T + b_fc


if __name__ == "__main__":
    # Module constants: input_size = fields_per_item = 4, hidden_size = 64.
    seq_len, batch, input_size = 8, 2, 4
    hidden_size, output_size = 64, 1

    key = jax.random.PRNGKey(0)
    keys = jax.random.split(key, 8)

    # Deterministic PyTorch-style init: uniform(-1/sqrt(H), 1/sqrt(H)).
    bound = 1.0 / jnp.sqrt(jnp.float32(hidden_size))
    w_ih = jax.random.uniform(keys[0], (hidden_size, input_size), jnp.float32, -bound, bound)
    w_hh = jax.random.uniform(keys[1], (hidden_size, hidden_size), jnp.float32, -bound, bound)
    b_ih = jax.random.uniform(keys[2], (hidden_size,), jnp.float32, -bound, bound)
    b_hh = jax.random.uniform(keys[3], (hidden_size,), jnp.float32, -bound, bound)
    w_fc = jax.random.uniform(keys[4], (output_size, hidden_size), jnp.float32, -bound, bound)
    b_fc = jax.random.uniform(keys[5], (output_size,), jnp.float32, -bound, bound)

    x = jax.random.normal(keys[6], (seq_len, batch, input_size), jnp.float32)

    # One-time weight packing (off the hot path).
    packed = jax.block_until_ready(pack_params(w_ih, w_hh, b_ih, b_hh, w_fc, b_fc))

    run = jax.jit(functools.partial(price_predictor_rnn,
                                    hidden_size=hidden_size,
                                    output_size=output_size))
    out = jax.block_until_ready(run(x, packed))

    ref = reference_rnn(x, w_ih, w_hh, b_ih, b_hh, w_fc, b_fc)
    assert out.shape == (batch, output_size), out.shape
    assert jnp.allclose(out, ref, atol=1e-4, rtol=1e-4), (out, ref)

    print("KERNEL_OK")
</pallas_src>

<mosaic_0001>
module attributes {stable_mosaic.version = 11 : i64} {
  func.func @rnn_kernel(%arg0: memref<8x2x4xf32, #tpu.memory_space<vmem>>, %arg1: memref<72x64xf32, #tpu.memory_space<vmem>>, %arg2: memref<2x1xf32, #tpu.memory_space<vmem>>) attributes {dimension_semantics = [], scalar_prefetch = 0 : i64, scratch_operands = 0 : i64, tpu.core_type = #tpu.core_type<tc>} {
    %c0 = arith.constant 0 : index
    %c0_0 = arith.constant 0 : index
    %c0_1 = arith.constant 0 : index
    %0 = vector.load %arg0[%c0, %c0_0, %c0_1] : memref<8x2x4xf32, #tpu.memory_space<vmem>>, vector<8x2x4xf32>
    %cst = arith.constant 0.000000e+00 : f32
    %1 = vector.broadcast %cst : f32 to vector<8x2x64xf32>
    %c68 = arith.constant 68 : index
    %c0_2 = arith.constant 0 : index
    %2 = vector.load %arg1[%c68, %c0_2] : memref<72x64xf32, #tpu.memory_space<vmem>>, vector<1x64xf32>
    %3 = vector.shape_cast %2 : vector<1x64xf32> to vector<1x1x64xf32>
    %4 = vector.broadcast %3 : vector<1x1x64xf32> to vector<8x2x64xf32>
    %5 = arith.addf %1, %4 : vector<8x2x64xf32>
    %6 = vector.extract_strided_slice %0 {offsets = [0, 0, 0], sizes = [8, 2, 1], strides = [1, 1, 1]} : vector<8x2x4xf32> to vector<8x2x1xf32>
    %c64 = arith.constant 64 : index
    %c0_3 = arith.constant 0 : index
    %7 = vector.load %arg1[%c64, %c0_3] : memref<72x64xf32, #tpu.memory_space<vmem>>, vector<1x64xf32>
    %8 = vector.shape_cast %7 : vector<1x64xf32> to vector<1x1x64xf32>
    %9 = vector.broadcast %6 : vector<8x2x1xf32> to vector<8x2x64xf32>
    %10 = vector.broadcast %8 : vector<1x1x64xf32> to vector<8x2x64xf32>
    %11 = arith.mulf %9, %10 : vector<8x2x64xf32>
    %12 = arith.addf %5, %11 : vector<8x2x64xf32>
    %13 = vector.extract_strided_slice %0 {offsets = [0, 0, 1], sizes = [8, 2, 1], strides = [1, 1, 1]} : vector<8x2x4xf32> to vector<8x2x1xf32>
    %c65 = arith.constant 65 : index
    %c0_4 = arith.constant 0 : index
    %14 = vector.load %arg1[%c65, %c0_4] : memref<72x64xf32, #tpu.memory_space<vmem>>, vector<1x64xf32>
    %15 = vector.shape_cast %14 : vector<1x64xf32> to vector<1x1x64xf32>
    %16 = vector.broadcast %13 : vector<8x2x1xf32> to vector<8x2x64xf32>
    %17 = vector.broadcast %15 : vector<1x1x64xf32> to vector<8x2x64xf32>
    %18 = arith.mulf %16, %17 : vector<8x2x64xf32>
    %19 = arith.addf %12, %18 : vector<8x2x64xf32>
    %20 = vector.extract_strided_slice %0 {offsets = [0, 0, 2], sizes = [8, 2, 1], strides = [1, 1, 1]} : vector<8x2x4xf32> to vector<8x2x1xf32>
    %c66 = arith.constant 66 : index
    %c0_5 = arith.constant 0 : index
    %21 = vector.load %arg1[%c66, %c0_5] : memref<72x64xf32, #tpu.memory_space<vmem>>, vector<1x64xf32>
    %22 = vector.shape_cast %21 : vector<1x64xf32> to vector<1x1x64xf32>
    %23 = vector.broadcast %20 : vector<8x2x1xf32> to vector<8x2x64xf32>
    %24 = vector.broadcast %22 : vector<1x1x64xf32> to vector<8x2x64xf32>
    %25 = arith.mulf %23, %24 : vector<8x2x64xf32>
    %26 = arith.addf %19, %25 : vector<8x2x64xf32>
    %27 = vector.extract_strided_slice %0 {offsets = [0, 0, 3], sizes = [8, 2, 1], strides = [1, 1, 1]} : vector<8x2x4xf32> to vector<8x2x1xf32>
    %c67 = arith.constant 67 : index
    %c0_6 = arith.constant 0 : index
    %28 = vector.load %arg1[%c67, %c0_6] : memref<72x64xf32, #tpu.memory_space<vmem>>, vector<1x64xf32>
    %29 = vector.shape_cast %28 : vector<1x64xf32> to vector<1x1x64xf32>
    %30 = vector.broadcast %27 : vector<8x2x1xf32> to vector<8x2x64xf32>
    %31 = vector.broadcast %29 : vector<1x1x64xf32> to vector<8x2x64xf32>
    %32 = arith.mulf %30, %31 : vector<8x2x64xf32>
    %33 = arith.addf %26, %32 : vector<8x2x64xf32>
    %c0_7 = arith.constant 0 : index
    %c0_8 = arith.constant 0 : index
    %34 = vector.load %arg1[%c0_7, %c0_8] : memref<72x64xf32, #tpu.memory_space<vmem>>, vector<64x64xf32>
    %cst_9 = arith.constant 0.000000e+00 : f32
    %35 = vector.broadcast %cst_9 : f32 to vector<2x64xf32>
    %36 = vector.extract_strided_slice %33 {offsets = [0, 0, 0], sizes = [1, 2, 64], strides = [1, 1, 1]} : vector<8x2x64xf32> to vector<1x2x64xf32>
    %37 = vector.shape_cast %36 : vector<1x2x64xf32> to vector<2x64xf32>
    %cst_10 = arith.constant dense<0.000000e+00> : vector<2x64xf32>
    %38 = tpu.matmul %35, %34, %cst_10 {dimension_numbers = #tpu.dot_dimension_numbers<[1], [0], [0], [1], [0, 0, 1, 1], [], []>} : vector<2x64xf32>, vector<64x64xf32>, vector<2x64xf32> -> vector<2x64xf32>
    %39 = arith.addf %37, %38 : vector<2x64xf32>
    %40 = math.tanh %39 : vector<2x64xf32>
    %41 = vector.extract_strided_slice %33 {offsets = [1, 0, 0], sizes = [1, 2, 64], strides = [1, 1, 1]} : vector<8x2x64xf32> to vector<1x2x64xf32>
    %42 = vector.shape_cast %41 : vector<1x2x64xf32> to vector<2x64xf32>
    %cst_11 = arith.constant dense<0.000000e+00> : vector<2x64xf32>
    %43 = tpu.matmul %40, %34, %cst_11 {dimension_numbers = #tpu.dot_dimension_numbers<[1], [0], [0], [1], [0, 0, 1, 1], [], []>} : vector<2x64xf32>, vector<64x64xf32>, vector<2x64xf32> -> vector<2x64xf32>
    %44 = arith.addf %42, %43 : vector<2x64xf32>
    %45 = math.tanh %44 : vector<2x64xf32>
    %46 = vector.extract_strided_slice %33 {offsets = [2, 0, 0], sizes = [1, 2, 64], strides = [1, 1, 1]} : vector<8x2x64xf32> to vector<1x2x64xf32>
    %47 = vector.shape_cast %46 : vector<1x2x64xf32> to vector<2x64xf32>
    %cst_12 = arith.constant dense<0.000000e+00> : vector<2x64xf32>
    %48 = tpu.matmul %45, %34, %cst_12 {dimension_numbers = #tpu.dot_dimension_numbers<[1], [0], [0], [1], [0, 0, 1, 1], [], []>} : vector<2x64xf32>, vector<64x64xf32>, vector<2x64xf32> -> vector<2x64xf32>
    %49 = arith.addf %47, %48 : vector<2x64xf32>
    %50 = math.tanh %49 : vector<2x64xf32>
    %51 = vector.extract_strided_slice %33 {offsets = [3, 0, 0], sizes = [1, 2, 64], strides = [1, 1, 1]} : vector<8x2x64xf32> to vector<1x2x64xf32>
    %52 = vector.shape_cast %51 : vector<1x2x64xf32> to vector<2x64xf32>
    %cst_13 = arith.constant dense<0.000000e+00> : vector<2x64xf32>
    %53 = tpu.matmul %50, %34, %cst_13 {dimension_numbers = #tpu.dot_dimension_numbers<[1], [0], [0], [1], [0, 0, 1, 1], [], []>} : vector<2x64xf32>, vector<64x64xf32>, vector<2x64xf32> -> vector<2x64xf32>
    %54 = arith.addf %52, %53 : vector<2x64xf32>
    %55 = math.tanh %54 : vector<2x64xf32>
    %56 = vector.extract_strided_slice %33 {offsets = [4, 0, 0], sizes = [1, 2, 64], strides = [1, 1, 1]} : vector<8x2x64xf32> to vector<1x2x64xf32>
    %57 = vector.shape_cast %56 : vector<1x2x64xf32> to vector<2x64xf32>
    %cst_14 = arith.constant dense<0.000000e+00> : vector<2x64xf32>
    %58 = tpu.matmul %55, %34, %cst_14 {dimension_numbers = #tpu.dot_dimension_numbers<[1], [0], [0], [1], [0, 0, 1, 1], [], []>} : vector<2x64xf32>, vector<64x64xf32>, vector<2x64xf32> -> vector<2x64xf32>
    %59 = arith.addf %57, %58 : vector<2x64xf32>
    %60 = math.tanh %59 : vector<2x64xf32>
    %61 = vector.extract_strided_slice %33 {offsets = [5, 0, 0], sizes = [1, 2, 64], strides = [1, 1, 1]} : vector<8x2x64xf32> to vector<1x2x64xf32>
    %62 = vector.shape_cast %61 : vector<1x2x64xf32> to vector<2x64xf32>
    %cst_15 = arith.constant dense<0.000000e+00> : vector<2x64xf32>
    %63 = tpu.matmul %60, %34, %cst_15 {dimension_numbers = #tpu.dot_dimension_numbers<[1], [0], [0], [1], [0, 0, 1, 1], [], []>} : vector<2x64xf32>, vector<64x64xf32>, vector<2x64xf32> -> vector<2x64xf32>
    %64 = arith.addf %62, %63 : vector<2x64xf32>
    %65 = math.tanh %64 : vector<2x64xf32>
    %66 = vector.extract_strided_slice %33 {offsets = [6, 0, 0], sizes = [1, 2, 64], strides = [1, 1, 1]} : vector<8x2x64xf32> to vector<1x2x64xf32>
    %67 = vector.shape_cast %66 : vector<1x2x64xf32> to vector<2x64xf32>
    %cst_16 = arith.constant dense<0.000000e+00> : vector<2x64xf32>
    %68 = tpu.matmul %65, %34, %cst_16 {dimension_numbers = #tpu.dot_dimension_numbers<[1], [0], [0], [1], [0, 0, 1, 1], [], []>} : vector<2x64xf32>, vector<64x64xf32>, vector<2x64xf32> -> vector<2x64xf32>
    %69 = arith.addf %67, %68 : vector<2x64xf32>
    %70 = math.tanh %69 : vector<2x64xf32>
    %71 = vector.extract_strided_slice %33 {offsets = [7, 0, 0], sizes = [1, 2, 64], strides = [1, 1, 1]} : vector<8x2x64xf32> to vector<1x2x64xf32>
    %72 = vector.shape_cast %71 : vector<1x2x64xf32> to vector<2x64xf32>
    %cst_17 = arith.constant dense<0.000000e+00> : vector<2x64xf32>
    %73 = tpu.matmul %70, %34, %cst_17 {dimension_numbers = #tpu.dot_dimension_numbers<[1], [0], [0], [1], [0, 0, 1, 1], [], []>} : vector<2x64xf32>, vector<64x64xf32>, vector<2x64xf32> -> vector<2x64xf32>
    %74 = arith.addf %72, %73 : vector<2x64xf32>
    %75 = math.tanh %74 : vector<2x64xf32>
    %c69 = arith.constant 69 : index
    %c0_18 = arith.constant 0 : index
    %76 = vector.load %arg1[%c69, %c0_18] : memref<72x64xf32, #tpu.memory_space<vmem>>, vector<1x64xf32>
    %c70 = arith.constant 70 : index
    %c0_19 = arith.constant 0 : index
    %77 = vector.load %arg1[%c70, %c0_19] : memref<72x64xf32, #tpu.memory_space<vmem>>, vector<1x1xf32>
    %78 = vector.broadcast %76 : vector<1x64xf32> to vector<2x64xf32>
    %79 = arith.mulf %75, %78 : vector<2x64xf32>
    %cst_20 = arith.constant dense<0.000000e+00> : vector<2xf32>
    %80 = vector.multi_reduction <add>, %79, %cst_20 [1] : vector<2x64xf32> to vector<2xf32>
    %81 = vector.shape_cast %80 : vector<2xf32> to vector<2x1xf32>
    %82 = vector.broadcast %77 : vector<1x1xf32> to vector<2x1xf32>
    %83 = arith.addf %81, %82 : vector<2x1xf32>
    %c0_21 = arith.constant 0 : index
    %c0_22 = arith.constant 0 : index
    %84 = vector.load %arg2[%c0_21, %c0_22] : memref<2x1xf32, #tpu.memory_space<vmem>>, vector<2x1xf32>
    tpu.vector_store %arg2[%c0_21, %c0_22], %83 {strides = array<i32>} : memref<2x1xf32, #tpu.memory_space<vmem>>, vector<2x1xf32>,
    return
  }
}

</mosaic_0001>

<bundles_post_ra>
// kernel: price_predictor_rnn.1
= control target key start
LH: loop header
LB: loop body
LE: loop exit
PB: predicated region body
PF: predicated region fallthrough
CT: control target
= control target key end

     0   :  { %v1264_v0 = vmov 0.0|0.0   ;;  %vm1265_vm0 = vmmov 0   ;;  %v1266_v4 = vmov 0.0   ;;  %v1267_v7 = vmov 2   ;;  %s1535_s1 = inlined_call_operand.vmem [shape: f32[72,64], index: 1, kind: input, shape index: {}]   ;;  %s1536_s0 = inlined_call_operand.vmem [shape: f32[8,2,4], index: 0, kind: input, shape index: {}]   ;;  %s1537_s2 = inlined_call_operand.vmem [shape: f32[2,1], index: 2, kind: output, shape index: {}]  }
   0x1   :  { %1114 = vmatprep.subr.bf16.mxu0 %v1264_v0  ;;  %v245_v1 = vld [vmem:[%s1535_s1] sm:$0xff]  ;;  %v246_v2 = vld [vmem:[%s1535_s1 + $0x8] sm:$0xff]  ;;  %v247_v3 = vld [vmem:[%s1535_s1 + $0x10] sm:$0xff]  ;;  %978 = vmatprep.mubr.msk.f32.mxu0 %vm1265_vm0, %v1266_v4  ;;  %v1268_v8 = vmov 0   ;;  %v1269_v14 = vmov 3   ;;  %v1270_v17 = vmov 1  }
   0x2   :  { %v1298_v5 = vpack.c.bf16 %v246_v2, %v245_v1  ;;  %v248_v6 = vld [vmem:[%s1535_s1 + $0x18] sm:$0xff]  ;;  %1219 = vset.pattern.permute.xlu1 %v1267_v7  ;;  %1217 = vset.pattern.permute.xlu0 %v1268_v8  ;;  %v11_v9 = vld [vmem:[%s1536_s0] sm:$0x3]  ;;  %v250_v12 = vld [vmem:[%s1535_s1 + $0x28] sm:$0xff]  ;;  %vm253_vm1 = vcmask 523264   ;;  %vm861_vm2 = vcmask 517120  }
   0x3   :  { %1126 = vmatprep.subr.bf16.mxu1 %v1264_v0  ;;  %997 = vmatprep.mubr.msk.f32.mxu1 %vm1265_vm0, %v1266_v4  ;;  %v1312_v10 = vpack.c.bf16 %v248_v6, %v247_v3  ;;  %v249_v11 = vld [vmem:[%s1535_s1 + $0x20] sm:$0xff]  ;;  %v251_v15 = vld [vmem:[%s1535_s1 + $0x30] sm:$0xff]  ;;  %v252_v16 = vld [vmem:[%s1535_s1 + $0x38] sm:$0xff]  ;;  %vm870_vm3 = vcmask 1024  }
   0x4   :  { %1116 = vmatpush3.bf16.msra.mxu0 %v1298_v5  ;;  %141 = vperm.xlu1 %1219, %v11_v9   ;;  %v1324_v13 = vpack.c.bf16 %v250_v12, %v249_v11  ;;  %v12_v18 = vld [vmem:[%s1536_s0 + $0x2] sm:$0x3]  ;;  %v1341_v19 = vpack.c.bf16 %v252_v16, %v251_v15  ;;  %v1369_v21 = vld [vmem:[%s1535_s1 + $0x40] ss:$0 sm:$0xff]  ;;  %v1375_v23 = vld [vmem:[%s1535_s1 + $0x44] ss:$0 sm:$0xff] }
   0x5   :  { %1117 = vmatprep.subr.bf16.mxu0 %v1264_v0  ;;  %28 = vperm.xlu0 %1217, %v11_v9   ;;  %v1380_v24 = vld [vmem:[%s1535_s1 + $0x41] ss:$0 sm:$0xff]  ;;  %v1387_v28 = vld [vmem:[%s1535_s1 + $0x42] ss:$0 sm:$0xff]  ;;  %v1393_v32 = vld [vmem:[%s1535_s1 + $0x43] ss:$0 sm:$0xff] }
   0x6   :  { %1128 = vmatpush3.bf16.msra.mxu1 %v1298_v5  ;;  %v13_v41 = vld [vmem:[%s1536_s0 + $0x4] sm:$0x3]  ;;  %v14_v58 = vld [vmem:[%s1536_s0 + $0x6] sm:$0x3] }
   0x7   :  { %1129 = vmatprep.subr.bf16.mxu1 %v1264_v0 }
   0x8   :  { %1119 = vmatpush3.bf16.msra.mxu0 %v1312_v10  ;;  %1220 = vset.pattern.permute.xlu1 %v1269_v14 }
   0x9   :  { %1120 = vmatprep.subr.bf16.mxu0 %v1264_v0  ;;  %194 = vperm.xlu1 %1220, %v11_v9  }
   0xa   :  { %1218 = vset.pattern.permute.xlu0 %v1270_v17  ;;  %1131 = vmatpush3.bf16.msra.mxu1 %v1312_v10 }
   0xb   :  { %88 = vperm.xlu0 %1218, %v11_v9   ;;  %1132 = vmatprep.subr.bf16.mxu1 %v1264_v0 }
   0xc   :  { %1122 = vmatpush3.bf16.msra.mxu0 %v1324_v13 }
   0xd   :  { %1123 = vmatprep.subr.bf16.mxu0 %v1264_v0  ;;  %1221 = vset.pattern.permute.xlu1 %v1268_v8 }
   0xe   :  { %33 = vperm.xlu1 %1221, %v12_v18   ;;  %1134 = vmatpush3.bf16.msra.mxu1 %v1324_v13 }
   0xf   :  { %92 = vperm.xlu0 %1218, %v12_v18   ;;  %1135 = vmatprep.subr.bf16.mxu1 %v1264_v0 }
  0x10   :  { %1125 = vmatpush3.bf16.msra.mxu0 %v1341_v19 }
  0x11   :  { %1138 = vmatprep.subr.bf16.mxu0 %v1264_v0 }
  0x12   :  { %1222 = vset.pattern.permute.xlu1 %v1267_v7  ;;  %1137 = vmatpush3.bf16.msra.mxu1 %v1341_v19 }
  0x13   :  { %979 = vmatmul.mubr.f32.vlgmr.msra.gmra.mrb[0].mxu0 %v1266_v4  ;;  %145 = vperm.xlu1 %1222, %v12_v18  }
  0x14   :  { %1223 = vset.pattern.permute.xlu0 %v1269_v14  ;;  %1140 = vmatpush3.bf16.msra.mxu0 %v1298_v5 }
  0x15   :  { %198 = vperm.xlu0 %1223, %v12_v18   ;;  %1141 = vmatprep.subr.bf16.mxu0 %v1264_v0 }
  0x16   :  { %1016 = vmatprep.mubr.msk.f32.mxu0 %vm1265_vm0, %v1266_v4  ;;  %1150 = vmatprep.subr.bf16.mxu1 %v1264_v0 }
  0x17   :  { %1224 = vset.pattern.permute.xlu1 %v1268_v8 }
  0x18   :  { %1143 = vmatpush3.bf16.msra.mxu0 %v1312_v10  ;;  %38 = vperm.xlu1 %1224, %v13_v41  }
  0x19   :  { %1144 = vmatprep.subr.bf16.mxu0 %v1264_v0  ;;  %1226 = vset.pattern.permute.xlu0 %v1267_v7 }
  0x1a   :  { %149 = vperm.xlu0 %1226, %v13_v41  }
  0x1c   :  { %1146 = vmatpush3.bf16.msra.mxu0 %v1324_v13  ;;  %1225 = vset.pattern.permute.xlu1 %v1270_v17 }
  0x1d   :  { %1147 = vmatprep.subr.bf16.mxu0 %v1264_v0  ;;  %96 = vperm.xlu1 %1225, %v13_v41  }
  0x1e   :  { %1229 = vset.pattern.permute.xlu0 %v1270_v17 }
  0x1f   :  { %100 = vperm.xlu0 %1229, %v14_v58  }
  0x20   :  { %1149 = vmatpush3.bf16.msra.mxu0 %v1341_v19 }
  0x21   :  { %1162 = vmatprep.subr.bf16.mxu0 %v1264_v0  ;;  %1227 = vset.pattern.permute.xlu1 %v1269_v14 }
  0x22   :  { %202 = vperm.xlu1 %1227, %v13_v41  }
  0x23   :  { %1232 = vset.pattern.permute.xlu0 %v1268_v8 }
  0x26   :  { %1228 = vset.pattern.permute.xlu1 %v1268_v8 }
  0x27   :  { %43 = vperm.xlu1 %1228, %v14_v58  }
  0x2b   :  { %1230 = vset.pattern.permute.xlu1 %v1267_v7 }
  0x2c   :  { %153 = vperm.xlu1 %1230, %v14_v58  }
  0x30   :  { %1231 = vset.pattern.permute.xlu1 %v1269_v14 }
  0x31   :  { %206 = vperm.xlu1 %1231, %v14_v58  }
  0x35   :  { %1233 = vset.pattern.permute.xlu1 %v1270_v17 }
  0x83   :  { %v142_v29 = vpop.permute.xlu1 %141 }
  0x84   :  { %v29_v20 = vpop.permute.xlu0 %28  ;;  %v176_v30 = vmul.f32 %v1387_v28, %v142_v29 }
  0x85   :  { %v70_v22 = vmul.f32 %v1369_v21, %v29_v20 }
  0x87   :  { %v78_v26 = vadd.f32 %v1375_v23, %v70_v22  ;;  %v15_v22 = vld [vmem:[%s1536_s0 + $0x8] sm:$0x3] }
  0x88   :  { %v195_v33 = vpop.permute.xlu1 %194  ;;  %104 = vperm.xlu1 %1233, %v15_v22   ;;  %48 = vperm.xlu0 %1232, %v15_v22  }
  0x89   :  { %v229_v34 = vmul.f32 %v1393_v32, %v195_v33 }
  0x8a   :  { %v89_v25 = vpop.permute.xlu0 %88 }
  0x8b   :  { %v123_v27 = vmul.f32 %v1380_v24, %v89_v25 }
  0x8c   :  { %1234 = vset.pattern.permute.xlu1 %v1267_v7  ;;  %1235 = vset.pattern.permute.xlu0 %v1269_v14 }
  0x8d   :  { %v131_v31 = vadd.f32 %v123_v27, %v78_v26  ;;  %v34_v42 = vpop.permute.xlu1 %33  ;;  %157 = vperm.xlu1 %1234, %v15_v22   ;;  %210 = vperm.xlu0 %1235, %v15_v22  }
  0x8e   :  { %v71_v43 = vmul.f32 %v1369_v21, %v34_v42  ;;  %v93_v44 = vpop.permute.xlu0 %92 }
  0x8f   :  { %v184_v35 = vadd.f32 %v176_v30, %v131_v31  ;;  %v124_v46 = vmul.f32 %v1380_v24, %v93_v44 }
  0x90   :  { %v79_v45 = vadd.f32 %v1375_v23, %v71_v43  ;;  %v16_v43 = vld [vmem:[%s1536_s0 + $0xa] sm:$0x3] }
  0x91   :  { %v237_v36 = vadd.f32 %v229_v34, %v184_v35  ;;  %1236 = vset.pattern.permute.xlu1 %v1268_v8  ;;  %1238 = vset.pattern.permute.xlu0 %v1267_v7 }
  0x92   :  { %v146_v47 = vpop.permute.xlu1 %145  ;;  %v132_v48 = vadd.f32 %v124_v46, %v79_v45  ;;  %53 = vperm.xlu1 %1236, %v16_v43   ;;  %161 = vperm.xlu0 %1238, %v16_v43  }
  0x93   :  { %v177_v49 = vmul.f32 %v1387_v28, %v146_v47 }
  0x94   :  { %v199_v50 = vpop.permute.xlu0 %198 }
  0x95   :  { %v185_v51 = vadd.f32 %v177_v49, %v132_v48  ;;  %v230_v52 = vmul.f32 %v1393_v32, %v199_v50 }
  0x96   :  { %1237 = vset.pattern.permute.xlu1 %v1270_v17  ;;  %1241 = vset.pattern.permute.xlu0 %v1270_v17 }
  0x97   :  { %v238_v53 = vadd.f32 %v230_v52, %v185_v51  ;;  %v39_v59 = vpop.permute.xlu1 %38  ;;  %108 = vperm.xlu1 %1237, %v16_v43  }
  0x98   :  { %v72_v60 = vmul.f32 %v1369_v21, %v39_v59 }
  0x99   :  { %v150_v1 = vpop.permute.xlu0 %149 }
  0x9a   :  { %v80_v62 = vadd.f32 %v1375_v23, %v72_v60  ;;  %v178_v3 = vmul.f32 %v1387_v28, %v150_v1  ;;  %v17_v60 = vld [vmem:[%s1536_s0 + $0xc] sm:$0x3] }
  0x9b   :  { %1239 = vset.pattern.permute.xlu1 %v1269_v14  ;;  %112 = vperm.xlu0 %1241, %v17_v60  }
  0x9c   :  { %v97_v61 = vpop.permute.xlu1 %96  ;;  %214 = vperm.xlu1 %1239, %v16_v43  }
  0x9d   :  { %v125_v63 = vmul.f32 %v1380_v24, %v97_v61 }
  0x9e   :  { %v101_v27 = vpop.permute.xlu0 %100 }
  0x9f   :  { %v133_v2 = vadd.f32 %v125_v63, %v80_v62  ;;  %v126_v31 = vmul.f32 %v1380_v24, %v101_v27  ;;  %1244 = vset.pattern.permute.xlu0 %v1268_v8 }
  0xa0   :  { %1240 = vset.pattern.permute.xlu1 %v1268_v8 }
  0xa1   :  { %v203_v6 = vpop.permute.xlu1 %202  ;;  %v186_v9 = vadd.f32 %v178_v3, %v133_v2  ;;  %58 = vperm.xlu1 %1240, %v17_v60  }
  0xa2   :  { %v231_v11 = vmul.f32 %v1393_v32, %v203_v6 }
  0xa4   :  { %v239_v12 = vadd.f32 %v231_v11, %v186_v9  ;;  %v18_v11 = vld [vmem:[%s1536_s0 + $0xe] sm:$0x3] }
  0xa5   :  { %1242 = vset.pattern.permute.xlu1 %v1267_v7  ;;  %63 = vperm.xlu0 %1244, %v18_v11  }
  0xa6   :  { %v44_v25 = vpop.permute.xlu1 %43  ;;  %165 = vperm.xlu1 %1242, %v17_v60  }
  0xa7   :  { %v73_v26 = vmul.f32 %v1369_v21, %v44_v25 }
  0xa9   :  { %v81_v30 = vadd.f32 %v1375_v23, %v73_v26  ;;  %1247 = vset.pattern.permute.xlu0 %v1269_v14 }
  0xaa   :  { %1243 = vset.pattern.permute.xlu1 %v1269_v14  ;;  %222 = vperm.xlu0 %1247, %v18_v11  }
  0xab   :  { %v154_v29 = vpop.permute.xlu1 %153  ;;  %v134_v34 = vadd.f32 %v126_v31, %v81_v30  ;;  %218 = vperm.xlu1 %1243, %v17_v60  }
  0xac   :  { %v179_v33 = vmul.f32 %v1387_v28, %v154_v29 }
  0xaf   :  { %1245 = vset.pattern.permute.xlu1 %v1270_v17 }
  0xb0   :  { %v207_v35 = vpop.permute.xlu1 %206  ;;  %116 = vperm.xlu1 %1245, %v18_v11  }
  0xb4   :  { %1246 = vset.pattern.permute.xlu1 %v1267_v7 }
  0xb5   :  { %169 = vperm.xlu1 %1246, %v18_v11  }
  0xe6   :  { %v323_v37 = vpop.f32.mrb[0].mxu0 }
  0xe7   :  { %v327_v38 = vadd.f32 %v323_v37, %v237_v36  ;;  %v980_v39 = vpop.f32.mrb[1].mxu0  ;;  %v232_v36 = vmul.f32 %v1393_v32, %v207_v35  ;;  %v187_v37 = vadd.f32 %v179_v33, %v134_v34 }
  0xe9   :  { %1248 = vtanh.f32 %v327_v38  ;;  %v240_v38 = vadd.f32 %v232_v36, %v187_v37 }
  0xf3   :  { %v1249_v40 = vpop.eup %1248 }
  0xf4   :  { %998 = vmatmul.mubr.msk.f32.vlgmr.msra.gmra.mrb[0].mxu1 %vm253_vm1, %v1249_v40 }
  0xf5   :  { %1152 = vmatpush3.bf16.msra.mxu1 %v1298_v5  ;;  %1035 = vmatprep.mubr.msk.f32.mxu1 %vm1265_vm0, %v1266_v4 }
  0xf6   :  { %1153 = vmatprep.subr.bf16.mxu1 %v1264_v0 }
  0xf9   :  { %1155 = vmatpush3.bf16.msra.mxu1 %v1312_v10 }
  0xfa   :  { %1156 = vmatprep.subr.bf16.mxu1 %v1264_v0 }
  0xfd   :  { %1158 = vmatpush3.bf16.msra.mxu1 %v1324_v13 }
  0xfe   :  { %1159 = vmatprep.subr.bf16.mxu1 %v1264_v0 }
 0x101   :  { %1161 = vmatpush3.bf16.msra.mxu1 %v1341_v19 }
 0x102   :  { %1174 = vmatprep.subr.bf16.mxu1 %v1264_v0 }
 0x107   :  { %v49_v44 = vpop.permute.xlu0 %48  ;;  %v105_v45 = vpop.permute.xlu1 %104 }
 0x108   :  { %v74_v46 = vmul.f32 %v1369_v21, %v49_v44  ;;  %v127_v47 = vmul.f32 %v1380_v24, %v105_v45 }
 0x10a   :  { %v82_v48 = vadd.f32 %v1375_v23, %v74_v46 }
 0x10c   :  { %v158_v49 = vpop.permute.xlu1 %157  ;;  %v135_v50 = vadd.f32 %v127_v47, %v82_v48  ;;  %v211_v52 = vpop.permute.xlu0 %210 }
 0x10d   :  { %v180_v51 = vmul.f32 %v1387_v28, %v158_v49 }
 0x1c7   :  { %v398_v54 = vpop.f32.mrb[0].mxu1 }
 0x1c8   :  { %v402_v55 = vadd.f32 %v398_v54, %v238_v53  ;;  %v999_v56 = vpop.f32.mrb[1].mxu1  ;;  %v188_v53 = vadd.f32 %v180_v51, %v135_v50  ;;  %v233_v54 = vmul.f32 %v1393_v32, %v211_v52 }
 0x1ca   :  { %1250 = vtanh.f32 %v402_v55  ;;  %v241_v55 = vadd.f32 %v233_v54, %v188_v53 }
 0x1d4   :  { %v1251_v57 = vpop.eup %1250 }
 0x1d5   :  { %1017 = vmatmul.mubr.msk.f32.vlgmr.msra.gmra.mrb[2].mxu0 %vm253_vm1, %v1251_v57 }
 0x1d6   :  { %1164 = vmatpush3.bf16.msra.mxu0 %v1298_v5  ;;  %1054 = vmatprep.mubr.msk.f32.mxu0 %vm1265_vm0, %v1266_v4 }
 0x1d7   :  { %1165 = vmatprep.subr.bf16.mxu0 %v1264_v0 }
 0x1da   :  { %1167 = vmatpush3.bf16.msra.mxu0 %v1312_v10 }
 0x1db   :  { %1168 = vmatprep.subr.bf16.mxu0 %v1264_v0 }
 0x1de   :  { %1170 = vmatpush3.bf16.msra.mxu0 %v1324_v13 }
 0x1df   :  { %1171 = vmatprep.subr.bf16.mxu0 %v1264_v0 }
 0x1e2   :  { %1173 = vmatpush3.bf16.msra.mxu0 %v1341_v19 }
 0x1e3   :  { %1186 = vmatprep.subr.bf16.mxu0 %v1264_v0 }
 0x2a8   :  { %v473_v15 = vpop.f32.mrb[2].mxu0 }
 0x2a9   :  { %v477_v16 = vadd.f32 %v473_v15, %v239_v12  ;;  %v1018_v18 = vpop.f32.mrb[3].mxu0 }
 0x2ab   :  { %1252 = vtanh.f32 %v477_v16 }
 0x2b5   :  { %v1253_v20 = vpop.eup %1252 }
 0x2b6   :  { %1036 = vmatmul.mubr.msk.f32.vlgmr.msra.gmra.mrb[2].mxu1 %vm253_vm1, %v1253_v20 }
 0x2b7   :  { %1176 = vmatpush3.bf16.msra.mxu1 %v1298_v5  ;;  %1073 = vmatprep.mubr.msk.f32.mxu1 %vm1265_vm0, %v1266_v4 }
 0x2b8   :  { %1177 = vmatprep.subr.bf16.mxu1 %v1264_v0 }
 0x2bb   :  { %1179 = vmatpush3.bf16.msra.mxu1 %v1312_v10 }
 0x2bc   :  { %1180 = vmatprep.subr.bf16.mxu1 %v1264_v0 }
 0x2bf   :  { %1182 = vmatpush3.bf16.msra.mxu1 %v1324_v13 }
 0x2c0   :  { %1183 = vmatprep.subr.bf16.mxu1 %v1264_v0 }
 0x2c3   :  { %1185 = vmatpush3.bf16.msra.mxu1 %v1341_v19 }
 0x2c4   :  { %1198 = vmatprep.subr.bf16.mxu1 %v1264_v0 }
 0x389   :  { %v548_v39 = vpop.f32.mrb[2].mxu1 }
 0x38a   :  { %v552_v40 = vadd.f32 %v548_v39, %v240_v38  ;;  %v1037_v41 = vpop.f32.mrb[3].mxu1 }
 0x38c   :  { %1254 = vtanh.f32 %v552_v40 }
 0x396   :  { %v1255_v42 = vpop.eup %1254 }
 0x397   :  { %1055 = vmatmul.mubr.msk.f32.vlgmr.msra.gmra.mrb[4].mxu0 %vm253_vm1, %v1255_v42 }
 0x398   :  { %1188 = vmatpush3.bf16.msra.mxu0 %v1298_v5  ;;  %1092 = vmatprep.mubr.msk.f32.mxu0 %vm1265_vm0, %v1266_v4 }
 0x399   :  { %1189 = vmatprep.subr.bf16.mxu0 %v1264_v0 }
 0x39c   :  { %1191 = vmatpush3.bf16.msra.mxu0 %v1312_v10 }
 0x39d   :  { %1192 = vmatprep.subr.bf16.mxu0 %v1264_v0 }
 0x3a0   :  { %1194 = vmatpush3.bf16.msra.mxu0 %v1324_v13 }
 0x3a1   :  { %1195 = vmatprep.subr.bf16.mxu0 %v1264_v0 }
 0x3a4   :  { %1197 = vmatpush3.bf16.msra.mxu0 %v1341_v19 }
 0x46a   :  { %v623_v56 = vpop.f32.mrb[4].mxu0 }
 0x46b   :  { %v627_v57 = vadd.f32 %v623_v56, %v241_v55  ;;  %v1056_v58 = vpop.f32.mrb[5].mxu0 }
 0x46d   :  { %1256 = vtanh.f32 %v627_v57 }
 0x477   :  { %v1257_v59 = vpop.eup %1256 }
 0x478   :  { %1074 = vmatmul.mubr.msk.f32.vlgmr.msra.gmra.mrb[4].mxu1 %vm253_vm1, %v1257_v59 }
 0x479   :  { %1200 = vmatpush3.bf16.msra.mxu1 %v1298_v5  ;;  %1111 = vmatprep.mubr.msk.f32.mxu1 %vm1265_vm0, %v1266_v4  ;;  %v54_v4 = vpop.permute.xlu1 %53 }
 0x47a   :  { %1201 = vmatprep.subr.bf16.mxu1 %v1264_v0 }
 0x47d   :  { %1203 = vmatpush3.bf16.msra.mxu1 %v1312_v10  ;;  %v109_v5 = vpop.permute.xlu1 %108 }
 0x47e   :  { %1204 = vmatprep.subr.bf16.mxu1 %v1264_v0 }
 0x481   :  { %1206 = vmatpush3.bf16.msra.mxu1 %v1324_v13  ;;  %v128_v13 = vmul.f32 %v1380_v24, %v109_v5  ;;  %v215_v63 = vpop.permute.xlu1 %214 }
 0x482   :  { %1207 = vmatprep.subr.bf16.mxu1 %v1264_v0  ;;  %v75_v0 = vmul.f32 %v1369_v21, %v54_v4  ;;  %v234_v1 = vmul.f32 %v1393_v32, %v215_v63 }
 0x484   :  { %v83_v10 = vadd.f32 %v1375_v23, %v75_v0 }
 0x485   :  { %1209 = vmatpush3.bf16.msra.mxu1 %v1341_v19  ;;  %v162_v19 = vpop.permute.xlu0 %161  ;;  %v59_v12 = vpop.permute.xlu1 %58 }
 0x486   :  { %v136_v61 = vadd.f32 %v128_v13, %v83_v10  ;;  %v181_v62 = vmul.f32 %v1387_v28, %v162_v19  ;;  %v76_v15 = vmul.f32 %v1369_v21, %v59_v12 }
 0x488   :  { %v189_v8 = vadd.f32 %v181_v62, %v136_v61  ;;  %v84_v20 = vadd.f32 %v1375_v23, %v76_v15 }
 0x489   :  { %v113_v16 = vpop.permute.xlu0 %112  ;;  %v166_v18 = vpop.permute.xlu1 %165 }
 0x48a   :  { %v242_v2 = vadd.f32 %v234_v1, %v189_v8  ;;  %v129_v22 = vmul.f32 %v1380_v24, %v113_v16  ;;  %v182_v25 = vmul.f32 %v1387_v28, %v166_v18 }
 0x48c   :  { %v137_v26 = vadd.f32 %v129_v22, %v84_v20 }
 0x48d   :  { %v219_v27 = vpop.permute.xlu1 %218  ;;  %v64_v35 = vpop.permute.xlu0 %63 }
 0x48e   :  { %v235_v29 = vmul.f32 %v1393_v32, %v219_v27  ;;  %v190_v7 = vadd.f32 %v182_v25, %v137_v26  ;;  %v77_v37 = vmul.f32 %v1369_v21, %v64_v35  ;;  %v888_v21 = vld [vmem:[%s1535_s1 + $0x45] ss:$0 sm:$0xff] }
 0x490   :  { %v243_v30 = vadd.f32 %v235_v29, %v190_v7  ;;  %v85_v39 = vadd.f32 %v1375_v23, %v77_v37 }
 0x491   :  { %v117_v36 = vpop.permute.xlu1 %116  ;;  %v223_v43 = vpop.permute.xlu0 %222 }
 0x492   :  { %v130_v38 = vmul.f32 %v1380_v24, %v117_v36  ;;  %v236_v45 = vmul.f32 %v1393_v32, %v223_v43 }
 0x494   :  { %v138_v41 = vadd.f32 %v130_v38, %v85_v39 }
 0x495   :  { %v170_v40 = vpop.permute.xlu1 %169 }
 0x496   :  { %v183_v42 = vmul.f32 %v1387_v28, %v170_v40  ;;  %v889_v28 = vld [vmem:[%s1535_s1 + $0x46] ss:$0 sm:$0xff] }
 0x498   :  { %v191_v44 = vadd.f32 %v183_v42, %v138_v41 }
 0x49a   :  { %v244_v46 = vadd.f32 %v236_v45, %v191_v44 }
 0x54b   :  { %v698_v3 = vpop.f32.mrb[4].mxu1 }
 0x54c   :  { %v702_v6 = vadd.f32 %v698_v3, %v242_v2  ;;  %v1075_v17 = vpop.f32.mrb[5].mxu1 }
 0x54e   :  { %1258 = vtanh.f32 %v702_v6 }
 0x558   :  { %v1259_v9 = vpop.eup %1258 }
 0x559   :  { %1093 = vmatmul.mubr.msk.f32.vlgmr.msra.gmra.mrb[6].mxu0 %vm253_vm1, %v1259_v9 }
 0x62c   :  { %v773_v14 = vpop.f32.mrb[6].mxu0 }
 0x62d   :  { %v777_v31 = vadd.f32 %v773_v14, %v243_v30  ;;  %v1094_v33 = vpop.f32.mrb[7].mxu0 }
 0x62f   :  { %1260 = vtanh.f32 %v777_v31 }
 0x639   :  { %v1261_v34 = vpop.eup %1260 }
 0x63a   :  { %1112 = vmatmul.mubr.msk.f32.vlgmr.msra.gmra.mrb[6].mxu1 %vm253_vm1, %v1261_v34 }
 0x70d   :  { %v848_v47 = vpop.f32.mrb[6].mxu1 }
 0x70e   :  { %v852_v48 = vadd.f32 %v848_v47, %v244_v46  ;;  %v1113_v49 = vpop.f32.mrb[7].mxu1 }
 0x710   :  { %1262 = vtanh.f32 %v852_v48 }
 0x71a   :  { %v1263_v24 = vpop.eup %1262 }
 0x71b   :  { %v860_v23 = vmul.f32 %v1263_v24, %v888_v21 }
 0x71d   :  { %v862_v50 = vsel %vm861_vm2, %v860_v23, 0.0 }
 0x71e   :  { %863 = vadd.xlane.f32.xlu1 %v862_v50 }
 0x7ab   :  { %v864_v32 = vpop.xlane.xlu1 %863 }
 0x7ac   :  { %v869_v51 = vadd.f32 %v889_v28, %v864_v32 }
 0x7ae   :  { %871 = vst.msk [vmem:[%s1537_s2] sm:$0x3] %vm870_vm3, %v869_v51 }

</bundles_post_ra>
